<compile_context>
chip_gen: v7x
topology: tpu7x:2x2x1
jax: 0.10.0
libtpu: 0.0.40
codegen_flags: <defaults>
</compile_context>

<pallas_src>
import functools

import jax
import jax.numpy as jnp
from jax.experimental import pallas as pl
from jax.experimental.pallas import tpu as pltpu

_LANES = 128


def _round_up(x, m):
    return (x + m - 1) // m * m


def _packing(n_relations):
    """Return (group, r_block, lanes): how many flat rows share one lane row."""
    lanes = _LANES if n_relations <= _LANES else _round_up(n_relations, _LANES)
    if lanes % n_relations == 0:
        group = lanes // n_relations          # e.g. R=16 -> pack 8 rows per 128 lanes
    else:
        group = 1                             # fallback: one (zero-padded) row per lane row
    r_block = lanes // group                  # lane width allotted to each packed flat row
    return group, r_block, lanes


def _default_num_tensorcores():
    # Generation gate: v7x exposes 2 TensorCores per chip (grid axis marked
    # "parallel" is sharded across them); v5e/v6e have one, so don't force a split.
    try:
        kind = jax.devices()[0].device_kind.lower()
    except Exception:
        return 1
    return 2 if "7" in kind else 1


def pack_angel_params(weight, bias, n_relations):
    """Build the block-diagonal W.T and tiled bias once (jit-time constants)."""
    group, r_block, lanes = _packing(n_relations)
    wt = jnp.asarray(weight, jnp.float32).T                    # (R, R): row = input relation
    b = jnp.asarray(bias, jnp.float32)
    wt_blk = jnp.zeros((lanes, lanes), jnp.float32)
    bias_blk = jnp.zeros((1, lanes), jnp.float32)
    for m in range(group):
        s = m * r_block
        wt_blk = wt_blk.at[s:s + n_relations, s:s + n_relations].set(wt)
        bias_blk = bias_blk.at[0, s:s + n_relations].set(b)
    return wt_blk, bias_blk


def _angel_kernel(lane_ids_ref, wt_ref, bias_ref, scores_ref, norm_ref, *,
                  group, exact_sigmoid):
    # lane_ids_ref : (T, group)   int32  target lane (m*r_block + rel) per packed slot, -1 = pad
    # wt_ref       : (L, L)       f32    block-diagonal W.T (resident across grid steps)
    # bias_ref     : (1, L)       f32    bias tiled per block
    # scores_ref   : (T, L)       f32
    # norm_ref     : (T, L)       f32 / bf16
    lane_ids = lane_ids_ref[...]                                  # (T, group)
    t = scores_ref.shape[0]
    lanes = wt_ref.shape[0]
    lane_iota = jax.lax.broadcasted_iota(jnp.int32, (t, lanes), 1)
    # One-hot row-select matrix: each packed slot m hits exactly one lane inside
    # its own R-wide block (pad ids were mapped to -1, so they hit nothing).
    hit = lane_iota == lane_ids[:, 0:1]
    for m in range(1, group):                                     # static unroll (group <= 128)
        hit = jnp.logical_or(hit, lane_iota == lane_ids[:, m:m + 1])
    onehot = hit.astype(jnp.float32)
    # Exact row gather of the block-diagonal [W.T; 0] table: one full MXU tile.
    scores = jnp.dot(onehot, wt_ref[...],
                     preferred_element_type=jnp.float32) + bias_ref[...]
    scores_ref[...] = scores
    if exact_sigmoid:
        norm = jax.nn.sigmoid(scores)
    else:
        # EUP exp + approx reciprocal; error << bf16 rounding of the output.
        norm = pl.reciprocal(1.0 + jnp.exp(-scores), approx=True)
    norm_ref[...] = norm.astype(norm_ref.dtype)


def angel_forward(path_ids, id2path, wt_blk, bias_blk, *,
                  batch_size, path_samples, max_path_len, n_relations,
                  norm_dtype=jnp.bfloat16, max_row_tile=8192,
                  num_tensorcores=None):
    """Pallas implementation of Angel._call_model for the chosen config.

    wt_blk / bias_blk come from pack_angel_params (built once).
    """
    group, r_block, lanes = _packing(n_relations)
    assert wt_blk.shape == (lanes, lanes) and bias_blk.shape == (1, lanes)

    seq = path_samples * max_path_len
    rows = batch_size * seq                                       # flat rows

    # --- glue: tiny int32 gathers stay in XLA; the heavy gather+linear+sigmoid
    #     runs in the Pallas kernel on a lane-packed slab. ---
    flat_path_ids = path_ids.reshape(batch_size * path_samples)
    rel_ids = id2path[flat_path_ids].reshape(rows).astype(jnp.int32)   # [rows], values in [0, R]

    # --- row tiling over packed rows (group flat rows per 128-lane output row) ---
    if num_tensorcores is None:
        num_tensorcores = _default_num_tensorcores()
    norm_dtype = jnp.dtype(norm_dtype)
    u = 16 if norm_dtype.itemsize < 4 else 8          # bf16 output block needs (16,128)

    max_out_tile = _round_up(max(1, max_row_tile // group), u)
    max_out_tile = max(u, min(max_out_tile, 2048))    # keep output blocks ~<= 1 MiB f32

    out_rows_min = _round_up(pl.cdiv(rows, group), u)
    n_steps = pl.cdiv(out_rows_min, max_out_tile)
    if num_tensorcores > 1:
        # Even grid count so both v7x TensorCores get equal work.
        n_steps = _round_up(max(n_steps, num_tensorcores), num_tensorcores)
    out_rows_pad = _round_up(out_rows_min, u * n_steps)   # minimal padding (not to tile size)
    out_row_tile = out_rows_pad // n_steps

    # Lane-packed ids: target lane (m*r_block + rel) per (packed row, slot m).
    # Pad id (== n_relations) and padded rows map to -1 -> zero table row -> scores = bias.
    rows_pad = out_rows_pad * group
    rel_p = jnp.pad(rel_ids, (0, rows_pad - rows), constant_values=n_relations)
    rel_p = rel_p.reshape(out_rows_pad, group)
    m_off = (jnp.arange(group, dtype=jnp.int32) * r_block)[None, :]
    lane_ids = jnp.where(rel_p < n_relations, rel_p + m_off, -1)

    kernel = functools.partial(_angel_kernel, group=group,
                               exact_sigmoid=(norm_dtype == jnp.float32))

    scores_p, norm_p = pl.pallas_call(
        kernel,
        out_shape=(
            jax.ShapeDtypeStruct((out_rows_pad, lanes), jnp.float32),
            jax.ShapeDtypeStruct((out_rows_pad, lanes), norm_dtype),
        ),
        grid_spec=pltpu.PrefetchScalarGridSpec(
            num_scalar_prefetch=0,
            grid=(n_steps,),
            in_specs=[
                pl.BlockSpec((out_row_tile, group), lambda i: (i, 0)),
                # Constant block index -> weight/bias tiles stay resident in VMEM
                # across grid steps (fetched once, not re-DMA'd per step).
                pl.BlockSpec((lanes, lanes), lambda i: (0, 0)),
                pl.BlockSpec((1, lanes), lambda i: (0, 0)),
            ],
            out_specs=[
                pl.BlockSpec((out_row_tile, lanes), lambda i: (i, 0)),
                pl.BlockSpec((out_row_tile, lanes), lambda i: (i, 0)),
            ],
        ),
        compiler_params=pltpu.CompilerParams(
            dimension_semantics=("parallel",)),
    )(lane_ids, wt_blk, bias_blk)

    def unpack(x):
        # (out_rows_pad, lanes) -> (out_rows_pad*group, r_block): contiguous, free reshape.
        x = x.reshape(out_rows_pad * group, r_block)
        if r_block != n_relations:                    # only in the group==1 fallback
            x = x[:, :n_relations]
        if rows_pad != rows:                          # trim only the few padded rows
            x = x[:rows]
        return x.reshape(batch_size, seq, n_relations)

    return unpack(scores_p), unpack(norm_p)


def angel_forward_ref(path_ids, id2path, weight, bias, *,
                      batch_size, path_samples, max_path_len, n_relations):
    """Pure-JAX reference mirroring the PyTorch code path exactly."""
    relation_features = jnp.concatenate(
        [jnp.eye(n_relations, dtype=jnp.float32),
         jnp.zeros((1, n_relations), dtype=jnp.float32)], axis=0)
    flat_ids = path_ids.reshape(batch_size * path_samples)
    paths = id2path[flat_ids]                                     # [B*P, L]
    pf = relation_features[paths]                                 # [B*P, L, R]
    pf = pf.reshape(batch_size, path_samples * max_path_len, n_relations)
    scores = pf @ weight.T + bias                                 # Linear(R, R)
    return scores, jax.nn.sigmoid(scores)


if __name__ == "__main__":
    # Small, deterministic shapes consistent with the module.
    batch_size = 2
    n_relations = 16        # args-derived "dim" of relation features
    path_samples = 4
    max_path_len = 4
    n_path_ids = 20         # number of distinct sampled paths (rows of id2path)

    key = jax.random.PRNGKey(0)
    k_ids, k_paths, k_w, k_b = jax.random.split(key, 4)

    # batch['path_ids'] : [batch_size, path_samples]
    path_ids = jax.random.randint(k_ids, (batch_size, path_samples), 0, n_path_ids,
                                  dtype=jnp.int32)
    # id2path : [n_path_ids, max_path_len], values in [0, n_relations] (R == padding)
    id2path = jax.random.randint(k_paths, (n_path_ids, max_path_len), 0,
                                 n_relations + 1, dtype=jnp.int32)
    # nn.Linear(n_relations, n_relations): xavier_uniform_ weight, default-uniform bias.
    xavier_bound = (6.0 / (n_relations + n_relations)) ** 0.5
    weight = jax.random.uniform(k_w, (n_relations, n_relations), jnp.float32,
                                -xavier_bound, xavier_bound)
    bias_bound = 1.0 / (n_relations ** 0.5)
    bias = jax.random.uniform(k_b, (n_relations,), jnp.float32,
                              -bias_bound, bias_bound)

    # Packed (block-diagonal) parameters built once, reused every forward.
    wt_blk, bias_blk = pack_angel_params(weight, bias, n_relations)

    common = dict(batch_size=batch_size, path_samples=path_samples,
                  max_path_len=max_path_len, n_relations=n_relations)

    # Default (bandwidth-optimized) call: bf16 normalized scores.
    scores, scores_norm_bf16 = angel_forward(path_ids, id2path, wt_blk, bias_blk,
                                             **common)
    # Exact-numerics call: f32 normalized scores.
    scores32, scores_norm_f32 = angel_forward(path_ids, id2path, wt_blk, bias_blk,
                                              norm_dtype=jnp.float32, **common)
    jax.block_until_ready((scores, scores_norm_bf16, scores32, scores_norm_f32))

    scores_ref, scores_norm_ref = angel_forward_ref(path_ids, id2path, weight, bias,
                                                    **common)

    assert scores.shape == (batch_size, path_samples * max_path_len, n_relations)
    assert scores_norm_bf16.dtype == jnp.bfloat16
    assert jnp.allclose(scores, scores_ref, atol=1e-5, rtol=1e-5)
    assert jnp.allclose(scores32, scores_ref, atol=1e-5, rtol=1e-5)
    assert jnp.allclose(scores_norm_f32, scores_norm_ref, atol=1e-5, rtol=1e-5)
    assert jnp.allclose(scores_norm_bf16.astype(jnp.float32), scores_norm_ref,
                        atol=1e-2, rtol=1e-2)
    print("KERNEL_OK")
</pallas_src>

<mosaic_0001>
module attributes {stable_mosaic.version = 11 : i64} {
  func.func @_angel_kernel(%arg0: i32, %arg1: memref<16x8xi32, #tpu.memory_space<vmem>>, %arg2: memref<128x128xf32, #tpu.memory_space<vmem>>, %arg3: memref<1x128xf32, #tpu.memory_space<vmem>>, %arg4: memref<16x128xf32, #tpu.memory_space<vmem>>, %arg5: memref<16x128xbf16, #tpu.memory_space<vmem>>) attributes {dimension_semantics = [#tpu.dimension_semantics<parallel>], iteration_bounds = array<i64: 1>, scalar_prefetch = 0 : i64, scratch_operands = 0 : i64, tpu.core_type = #tpu.core_type<tc>, window_params = [{transform_indices = @transform_0, window_bounds = array<i64: 16, 8>}, {pipeline_mode = #tpu.pipeline_mode<synchronous>, transform_indices = @transform_1, window_bounds = array<i64: 128, 128>}, {pipeline_mode = #tpu.pipeline_mode<synchronous>, transform_indices = @transform_2, window_bounds = array<i64: 1, 128>}, {transform_indices = @transform_3, window_bounds = array<i64: 16, 128>}, {transform_indices = @transform_4, window_bounds = array<i64: 16, 128>}]} {
    %c0 = arith.constant 0 : index
    %c0_0 = arith.constant 0 : index
    %0 = vector.load %arg1[%c0, %c0_0] : memref<16x8xi32, #tpu.memory_space<vmem>>, vector<16x8xi32>
    %1 = tpu.iota {dimensions = array<i32: 1>} : vector<16x128xi32>
    %2 = vector.extract_strided_slice %0 {offsets = [0, 0], sizes = [16, 1], strides = [1, 1]} : vector<16x8xi32> to vector<16x1xi32>
    %3 = vector.broadcast %2 : vector<16x1xi32> to vector<16x128xi32>
    %4 = arith.cmpi eq, %1, %3 : vector<16x128xi32>
    %5 = vector.extract_strided_slice %0 {offsets = [0, 1], sizes = [16, 1], strides = [1, 1]} : vector<16x8xi32> to vector<16x1xi32>
    %6 = vector.broadcast %5 : vector<16x1xi32> to vector<16x128xi32>
    %7 = arith.cmpi eq, %1, %6 : vector<16x128xi32>
    %8 = arith.ori %4, %7 : vector<16x128xi1>
    %9 = vector.extract_strided_slice %0 {offsets = [0, 2], sizes = [16, 1], strides = [1, 1]} : vector<16x8xi32> to vector<16x1xi32>
    %10 = vector.broadcast %9 : vector<16x1xi32> to vector<16x128xi32>
    %11 = arith.cmpi eq, %1, %10 : vector<16x128xi32>
    %12 = arith.ori %8, %11 : vector<16x128xi1>
    %13 = vector.extract_strided_slice %0 {offsets = [0, 3], sizes = [16, 1], strides = [1, 1]} : vector<16x8xi32> to vector<16x1xi32>
    %14 = vector.broadcast %13 : vector<16x1xi32> to vector<16x128xi32>
    %15 = arith.cmpi eq, %1, %14 : vector<16x128xi32>
    %16 = arith.ori %12, %15 : vector<16x128xi1>
    %17 = vector.extract_strided_slice %0 {offsets = [0, 4], sizes = [16, 1], strides = [1, 1]} : vector<16x8xi32> to vector<16x1xi32>
    %18 = vector.broadcast %17 : vector<16x1xi32> to vector<16x128xi32>
    %19 = arith.cmpi eq, %1, %18 : vector<16x128xi32>
    %20 = arith.ori %16, %19 : vector<16x128xi1>
    %21 = vector.extract_strided_slice %0 {offsets = [0, 5], sizes = [16, 1], strides = [1, 1]} : vector<16x8xi32> to vector<16x1xi32>
    %22 = vector.broadcast %21 : vector<16x1xi32> to vector<16x128xi32>
    %23 = arith.cmpi eq, %1, %22 : vector<16x128xi32>
    %24 = arith.ori %20, %23 : vector<16x128xi1>
    %25 = vector.extract_strided_slice %0 {offsets = [0, 6], sizes = [16, 1], strides = [1, 1]} : vector<16x8xi32> to vector<16x1xi32>
    %26 = vector.broadcast %25 : vector<16x1xi32> to vector<16x128xi32>
    %27 = arith.cmpi eq, %1, %26 : vector<16x128xi32>
    %28 = arith.ori %24, %27 : vector<16x128xi1>
    %29 = vector.extract_strided_slice %0 {offsets = [0, 7], sizes = [16, 1], strides = [1, 1]} : vector<16x8xi32> to vector<16x1xi32>
    %30 = vector.broadcast %29 : vector<16x1xi32> to vector<16x128xi32>
    %31 = arith.cmpi eq, %1, %30 : vector<16x128xi32>
    %32 = arith.ori %28, %31 : vector<16x128xi1>
    %33 = arith.extui %32 : vector<16x128xi1> to vector<16x128xi32>
    %34 = arith.sitofp %33 : vector<16x128xi32> to vector<16x128xf32>
    %c0_1 = arith.constant 0 : index
    %c0_2 = arith.constant 0 : index
    %35 = vector.load %arg2[%c0_1, %c0_2] : memref<128x128xf32, #tpu.memory_space<vmem>>, vector<128x128xf32>
    %cst = arith.constant dense<0.000000e+00> : vector<16x128xf32>
    %36 = tpu.matmul %34, %35, %cst {dimension_numbers = #tpu.dot_dimension_numbers<[1], [0], [0], [1], [0, 0, 1, 1], [], []>} : vector<16x128xf32>, vector<128x128xf32>, vector<16x128xf32> -> vector<16x128xf32>
    %c0_3 = arith.constant 0 : index
    %c0_4 = arith.constant 0 : index
    %37 = vector.load %arg3[%c0_3, %c0_4] : memref<1x128xf32, #tpu.memory_space<vmem>>, vector<1x128xf32>
    %38 = vector.broadcast %37 : vector<1x128xf32> to vector<16x128xf32>
    %39 = arith.addf %36, %38 : vector<16x128xf32>
    %c0_5 = arith.constant 0 : index
    %c0_6 = arith.constant 0 : index
    %40 = vector.load %arg4[%c0_5, %c0_6] : memref<16x128xf32, #tpu.memory_space<vmem>>, vector<16x128xf32>
    tpu.vector_store %arg4[%c0_5, %c0_6], %39 {strides = array<i32>} : memref<16x128xf32, #tpu.memory_space<vmem>>, vector<16x128xf32>,
    %cst_7 = arith.constant 0.000000e+00 : f32
    %41 = vector.broadcast %cst_7 : f32 to vector<16x128xf32>
    %42 = arith.subf %41, %39 : vector<16x128xf32>
    %43 = math.exp %42 : vector<16x128xf32>
    %cst_8 = arith.constant 1.000000e+00 : f32
    %44 = vector.broadcast %cst_8 : f32 to vector<16x128xf32>
    %45 = arith.addf %44, %43 : vector<16x128xf32>
    %46 = tpu.reciprocal %45 {approx = true} : vector<16x128xf32> -> vector<16x128xf32>
    %47 = arith.truncf %46 : vector<16x128xf32> to vector<16x128xbf16>
    %c0_9 = arith.constant 0 : index
    %c0_10 = arith.constant 0 : index
    %48 = vector.load %arg5[%c0_9, %c0_10] : memref<16x128xbf16, #tpu.memory_space<vmem>>, vector<16x128xbf16>
    tpu.vector_store %arg5[%c0_9, %c0_10], %47 {strides = array<i32>} : memref<16x128xbf16, #tpu.memory_space<vmem>>, vector<16x128xbf16>,
    return
  }
  func.func @transform_0(%arg0: i32) -> (i32, i32) {
    %c0_i32 = arith.constant 0 : i32
    %c0_i32_0 = arith.constant 0 : i32
    return %arg0, %c0_i32 : i32, i32
  }
  func.func @transform_1(%arg0: i32) -> (i32, i32) {
    %c0_i32 = arith.constant 0 : i32
    %c0_i32_0 = arith.constant 0 : i32
    %c0_i32_1 = arith.constant 0 : i32
    return %c0_i32, %c0_i32_0 : i32, i32
  }
  func.func @transform_2(%arg0: i32) -> (i32, i32) {
    %c0_i32 = arith.constant 0 : i32
    %c0_i32_0 = arith.constant 0 : i32
    %c0_i32_1 = arith.constant 0 : i32
    return %c0_i32, %c0_i32_0 : i32, i32
  }
  func.func @transform_3(%arg0: i32) -> (i32, i32) {
    %c0_i32 = arith.constant 0 : i32
    %c0_i32_0 = arith.constant 0 : i32
    return %arg0, %c0_i32 : i32, i32
  }
  func.func @transform_4(%arg0: i32) -> (i32, i32) {
    %c0_i32 = arith.constant 0 : i32
    %c0_i32_0 = arith.constant 0 : i32
    return %arg0, %c0_i32 : i32, i32
  }
}

</mosaic_0001>

<bundles_post_ra>
// kernel: tpu_custom_call.1
= control target key start
LH: loop header
LB: loop body
LE: loop exit
PB: predicated region body
PF: predicated region fallthrough
CT: control target
= control target key end

     0   :  { %10 = vsyncpa [#allocation3], 0  ;;  %s580_s0 = inlined_call_operand.vmem [shape: s32[16,8], index: 0, kind: input, shape index: {}]   ;;  %s581_s1 = inlined_call_operand.hbm [shape: f32[128,128], index: 1, kind: input, shape index: {}]   ;;  %s582_s2 = inlined_call_operand.vmem [shape: f32[1,128], index: 2, kind: input, shape index: {}]   ;;  %s583_s3 = inlined_call_operand.hbm [shape: f32[16,128], index: 3, kind: output, shape index: {0}]   ;;  %s584_s4 = inlined_call_operand.hbm [shape: bf16[16,128], index: 4, kind: output, shape index: {1}]  }
   0x1   :  { %11 = vsyncpa [#allocation4], 0 }
   0x2   :  { %12 = vsyncpa [#allocation7], 0  ;;  %s478_s15 = smov [#allocation2]   ;;  %s406_s19 = scalar_lea.hbm %s581_s1, 2048 }
   0x3   :  { %s20_s16 = sshll.u32 %s478_s15, 4  ;;  %p407_p0 = scmp.ne.s32.totalorder %s581_s1, %s406_s19  ;;  %s21_s16 = int_to_ptr.vmem [resolvable:$true] %s20_s16 }
   0x4   :  { %p410_p1 = scmp.lt.u32.totalorder %s406_s19, %s581_s1 }
   0x6   :  { %p412_p2 = pnand %p410_p1, %p407_p0 }
   0x8   :  { %415 = shalt.err (!%p412_p2)
}
   0x9   :  { %s416_s24 = scalar_lea.vmem %s21_s16, 2048  ;;  %p421_p4 = scmp.lt.s32.totalorder %s21_s16, %s21_s16 }
   0xa   :  { %p417_p3 = scmp.ne.s32.totalorder %s21_s16, %s416_s24  ;;  %p422_p5 = scmp.lt.s32.totalorder %s416_s24, %s416_s24 }
   0xc   :  { %p423_p6 = por %p422_p5, %p421_p4 }
   0xe   :  { %p424_p7 = pnand %p423_p6, %p417_p3 }
  0x10   :  { %427 = shalt.err (!%p424_p7)
}
  0x11   :  { %s479_s25 = smov 128   ;;  %s480_s26 = smov 8  }
  0x12   :  { %26 = dma.hbm_to_vmem [thread:$0]  %s581_s1, 2048, %s21_s16, [#allocation3], %s479_s25, %s479_s25, %s480_s26  }
  0x13   :  { %472 = dma.done.wait [#allocation3], 2048  }
  0x14   :  { %473 = vsyncadd [#allocation3], 4294965248  ;;  %v481_v0 = vmov 0   ;;  %v537_v1 = vld [vmem:[%s580_s0 + $0x8] sm:$0xff]  ;;  %v32_v2 = vld [vmem:[%s580_s0] sm:$0xff]  ;;  %v482_v3 = vmov 1   ;;  %v34_v40 = vlaneseq }
  0x15   :  { %386 = vset.pattern.permute.xlu1 %v481_v0  ;;  %384 = vset.pattern.permute.xlu0 %v481_v0  ;;  %v483_v4 = vmov 2   ;;  %v118_v5 = vld [vmem:[#allocation2] sm:$0xff]  ;;  %v119_v6 = vld [vmem:[#allocation2 + $0x8] sm:$0xff]  ;;  %v484_v8 = vmov 3   ;;  %v485_v9 = vmov 4   ;;  %v120_v10 = vld [vmem:[#allocation2 + $0x10] sm:$0xff] }
  0x16   :  { %40 = vperm.xlu1 %386, %v537_v1   ;;  %37 = vperm.xlu0 %384, %v32_v2   ;;  %v336_v7 = vpack.c.bf16 %v119_v6, %v118_v5  ;;  %v121_v11 = vld [vmem:[#allocation2 + $0x18] sm:$0xff]  ;;  %v486_v13 = vmov 5   ;;  %v122_v14 = vld [vmem:[#allocation2 + $0x20] sm:$0xff]  ;;  %v123_v15 = vld [vmem:[#allocation2 + $0x28] sm:$0xff]  ;;  %v487_v17 = vmov 7   ;;  %v488_v26 = vmov 6  }
  0x17   :  { %v340_v12 = vpack.c.bf16 %v121_v11, %v120_v10  ;;  %v344_v16 = vpack.c.bf16 %v123_v15, %v122_v14  ;;  %v124_v18 = vld [vmem:[#allocation2 + $0x30] sm:$0xff]  ;;  %v125_v19 = vld [vmem:[#allocation2 + $0x38] sm:$0xff]  ;;  %v126_v21 = vld [vmem:[#allocation2 + $0x40] sm:$0xff]  ;;  %v35_v43 = vand.u32 127, %v34_v40  ;;  %v489_v51 = vmov 0.0   ;;  %s490_s7 = smov [#allocation5]  }
  0x18   :  { %337 = vmatprep.subr.bf16.mxu0 %v336_v7  ;;  %v348_v20 = vpack.c.bf16 %v125_v19, %v124_v18  ;;  %v127_v22 = vld [vmem:[#allocation2 + $0x48] sm:$0xff]  ;;  %v128_v24 = vld [vmem:[#allocation2 + $0x50] sm:$0xff]  ;;  %v129_v25 = vld [vmem:[#allocation2 + $0x58] sm:$0xff]  ;;  %s243_s8 = sshll.u32 %s490_s7, 4  ;;  %s244_s8 = int_to_ptr.vmem [resolvable:$true] %s243_s8 }
  0x19   :  { %339 = vmatpush3.bf16.msra.mxu0 %v336_v7  ;;  %v352_v23 = vpack.c.bf16 %v127_v22, %v126_v21  ;;  %v356_v27 = vpack.c.bf16 %v129_v25, %v128_v24  ;;  %v130_v28 = vld [vmem:[#allocation2 + $0x60] sm:$0xff]  ;;  %v131_v29 = vld [vmem:[#allocation2 + $0x68] sm:$0xff]  ;;  %v132_v31 = vld [vmem:[#allocation2 + $0x70] sm:$0xff]  ;;  %s428_s9 = scalar_lea.vmem %s244_s8, 256  ;;  %p433_p9 = scmp.lt.s32.totalorder %s244_s8, %s244_s8 }
  0x1a   :  { %387 = vset.pattern.permute.xlu1 %v482_v3  ;;  %385 = vset.pattern.permute.xlu0 %v482_v3  ;;  %v360_v30 = vpack.c.bf16 %v131_v29, %v130_v28  ;;  %v133_v32 = vld [vmem:[#allocation2 + $0x78] sm:$0xff]  ;;  %v273_v55 = vld [vmem:[%s582_s2] ss:$0 sm:$0xff]  ;;  %p429_p8 = scmp.ne.s32.totalorder %s244_s8, %s428_s9  ;;  %p434_p10 = scmp.lt.s32.totalorder %s428_s9, %s428_s9 }
  0x1b   :  { %48 = vperm.xlu1 %387, %v537_v1   ;;  %45 = vperm.xlu0 %385, %v32_v2   ;;  %v364_v33 = vpack.c.bf16 %v133_v32, %v132_v31 }
  0x1c   :  { %341 = vmatprep.subr.bf16.mxu0 %v340_v12  ;;  %p435_p11 = por %p434_p10, %p433_p9 }
  0x1d   :  { %343 = vmatpush3.bf16.msra.mxu0 %v340_v12 }
  0x1e   :  { %345 = vmatprep.subr.bf16.mxu0 %v344_v16  ;;  %p436_p12 = pnand %p435_p11, %p429_p8 }
  0x1f   :  { %388 = vset.pattern.permute.xlu1 %v483_v4  ;;  %389 = vset.pattern.permute.xlu0 %v483_v4 }
  0x20   :  { %55 = vperm.xlu1 %388, %v32_v2   ;;  %58 = vperm.xlu0 %389, %v537_v1  }
  0x21   :  { %347 = vmatpush3.bf16.msra.mxu0 %v344_v16 }
  0x22   :  { %349 = vmatprep.subr.bf16.mxu0 %v348_v20 }
  0x24   :  { %390 = vset.pattern.permute.xlu1 %v484_v8  ;;  %391 = vset.pattern.permute.xlu0 %v485_v9 }
  0x25   :  { %65 = vperm.xlu1 %390, %v32_v2   ;;  %75 = vperm.xlu0 %391, %v32_v2  }
  0x26   :  { %351 = vmatpush3.bf16.msra.mxu0 %v348_v20 }
  0x27   :  { %353 = vmatprep.subr.bf16.mxu0 %v352_v23 }
  0x29   :  { %68 = vperm.xlu1 %390, %v537_v1   ;;  %394 = vset.pattern.permute.xlu0 %v486_v13 }
  0x2a   :  { %88 = vperm.xlu0 %394, %v537_v1   ;;  %355 = vmatpush3.bf16.msra.mxu0 %v352_v23 }
  0x2b   :  { %357 = vmatprep.subr.bf16.mxu0 %v356_v27 }
  0x2d   :  { %392 = vset.pattern.permute.xlu1 %v485_v9 }
  0x2e   :  { %78 = vperm.xlu1 %392, %v537_v1   ;;  %396 = vset.pattern.permute.xlu0 %v487_v17 }
  0x2f   :  { %105 = vperm.xlu0 %396, %v32_v2   ;;  %359 = vmatpush3.bf16.msra.mxu0 %v356_v27 }
  0x30   :  { %361 = vmatprep.subr.bf16.mxu0 %v360_v30 }
  0x32   :  { %393 = vset.pattern.permute.xlu1 %v486_v13 }
  0x33   :  { %85 = vperm.xlu1 %393, %v32_v2   ;;  %363 = vmatpush3.bf16.msra.mxu0 %v360_v30 }
  0x34   :  { %365 = vmatprep.subr.bf16.mxu0 %v364_v33 }
  0x37   :  { %395 = vset.pattern.permute.xlu1 %v488_v26  ;;  %367 = vmatpush3.bf16.msra.mxu0 %v364_v33 }
  0x38   :  { %95 = vperm.xlu1 %395, %v32_v2  }
  0x3c   :  { %98 = vperm.xlu1 %395, %v537_v1  }
  0x40   :  { %397 = vset.pattern.permute.xlu1 %v487_v17 }
  0x41   :  { %108 = vperm.xlu1 %397, %v537_v1  }
  0x95   :  { %v41_v34 = vpop.permute.xlu1 %40  ;;  %v38_v36 = vpop.permute.xlu0 %37 }
  0x96   :  { %vm42_vm0 = vcmp.eq.s32.totalorder %v35_v43, %v38_v36  ;;  %vm43_vm9 = vcmp.eq.s32.totalorder %v35_v43, %v41_v34 }
  0x9a   :  { %v49_v35 = vpop.permute.xlu1 %48  ;;  %v46_v38 = vpop.permute.xlu0 %45 }
  0x9b   :  { %vm50_vm1 = vcmp.eq.s32.totalorder %v35_v43, %v46_v38  ;;  %vm51_vm5 = vcmp.eq.s32.totalorder %v35_v43, %v49_v35 }
  0x9c   :  { %vm52_vm2 = vmor %vm42_vm0, %vm50_vm1 }
  0x9d   :  { %vm53_vm11 = vmor %vm43_vm9, %vm51_vm5 }
  0x9f   :  { %v56_v37 = vpop.permute.xlu1 %55  ;;  %v59_v41 = vpop.permute.xlu0 %58 }
  0xa0   :  { %vm60_vm3 = vcmp.eq.s32.totalorder %v35_v43, %v56_v37  ;;  %vm61_vm14 = vcmp.eq.s32.totalorder %v35_v43, %v59_v41 }
  0xa1   :  { %vm62_vm6 = vmor %vm52_vm2, %vm60_vm3 }
  0xa4   :  { %v66_v39 = vpop.permute.xlu1 %65  ;;  %v76_v44 = vpop.permute.xlu0 %75 }
  0xa5   :  { %vm70_vm4 = vcmp.eq.s32.totalorder %v35_v43, %v66_v39  ;;  %vm80_vm8 = vcmp.eq.s32.totalorder %v35_v43, %v76_v44 }
  0xa6   :  { %vm72_vm7 = vmor %vm62_vm6, %vm70_vm4 }
  0xa7   :  { %vm82_vm12 = vmor %vm72_vm7, %vm80_vm8 }
  0xa8   :  { %v69_v42 = vpop.permute.xlu1 %68  ;;  %vm63_vm6 = vmor %vm53_vm11, %vm61_vm14 }
  0xa9   :  { %v89_v46 = vpop.permute.xlu0 %88  ;;  %vm71_vm1 = vcmp.eq.s32.totalorder %v35_v43, %v69_v42 }
  0xaa   :  { %vm73_vm5 = vmor %vm63_vm6, %vm71_vm1  ;;  %vm91_vm7 = vcmp.eq.s32.totalorder %v35_v43, %v89_v46 }
  0xad   :  { %v79_v45 = vpop.permute.xlu1 %78 }
  0xae   :  { %v106_v48 = vpop.permute.xlu0 %105  ;;  %vm81_vm3 = vcmp.eq.s32.totalorder %v35_v43, %v79_v45 }
  0xaf   :  { %vm110_vm13 = vcmp.eq.s32.totalorder %v35_v43, %v106_v48  ;;  %vm83_vm9 = vmor %vm73_vm5, %vm81_vm3 }
  0xb2   :  { %v86_v47 = vpop.permute.xlu1 %85 }
  0xb3   :  { %vm90_vm10 = vcmp.eq.s32.totalorder %v35_v43, %v86_v47 }
  0xb4   :  { %vm92_vm15 = vmor %vm82_vm12, %vm90_vm10 }
  0xb5   :  { %vm93_vm10 = vmor %vm83_vm9, %vm91_vm7 }
  0xb7   :  { %v96_v49 = vpop.permute.xlu1 %95 }
  0xb8   :  { %vm100_vm0 = vcmp.eq.s32.totalorder %v35_v43, %v96_v49 }
  0xb9   :  { %vm102_vm2 = vmor %vm92_vm15, %vm100_vm0 }
  0xba   :  { %vm112_vm4 = vmor %vm102_vm2, %vm110_vm13 }
  0xbb   :  { %v99_v50 = vpop.permute.xlu1 %98  ;;  %v271_v52 = vsel %vm112_vm4, 1.0, %v489_v51 }
  0xbc   :  { %333 = vmatprep.mubr.f32.mxu0 %v271_v52  ;;  %vm101_vm8 = vcmp.eq.s32.totalorder %v35_v43, %v99_v50 }
  0xbd   :  { %vm103_vm12 = vmor %vm93_vm10, %vm101_vm8 }
  0xc0   :  { %v109_v53 = vpop.permute.xlu1 %108 }
  0xc1   :  { %vm111_vm0 = vcmp.eq.s32.totalorder %v35_v43, %v109_v53 }
  0xc2   :  { %vm113_vm15 = vmor %vm103_vm12, %vm111_vm0 }
  0xc3   :  { %v272_v54 = vsel %vm113_vm15, 1.0, %v489_v51 }
  0xc4   :  { %334 = vmatmul.mubr.f32.vlgmr.msra.gmra.mrb[0].mxu0 %v272_v54 }
 0x197   :  { %v335_v56 = vpop.f32.mrb[0].mxu0 }
 0x198   :  { %v213_v57 = vadd.f32 %v335_v56, %v273_v55  ;;  %v207_v58 = vpop.f32.mrb[1].mxu0 }
 0x199   :  { %v208_v59 = vadd.f32 %v273_v55, %v207_v58 }
 0x19a   :  { %217 = vst [vmem:[#allocation5 + $0x8] sm:$0xff] %v213_v57  ;;  %v219_v60 = vsub.f32 0.0, %v213_v57 }
 0x19b   :  { %216 = vst [vmem:[#allocation5] sm:$0xff] %v208_v59  ;;  %v218_v61 = vsub.f32 0.0, %v208_v59 }
 0x19c   :  { %v222_v62 = vmul.f32 1.442695, %v219_v60 }
 0x19d   :  { %439 = shalt.err (!%p436_p12)
}
 0x19e   :  { %s440_s11 = scalar_lea.hbm %s583_s3, 256 }
 0x19f   :  { %p441_p13 = scmp.ne.s32.totalorder %s583_s3, %s440_s11  ;;  %p444_p0 = scmp.lt.u32.totalorder %s440_s11, %s583_s3 }
 0x1a1   :  { %p446_p1 = pnand %p444_p0, %p441_p13 }
 0x1a3   :  { %449 = shalt.err (!%p446_p1)
}
 0x1a4   :  { %249 = dma.vmem_to_hbm [thread:$0]  %s244_s8, 256, %s583_s3, [#allocation4], %s479_s25, %s479_s25, %s480_s26   ;;  %v220_v63 = vmul.f32 1.442695, %v218_v61  ;;  %398 = vpow2.f32 %v222_v62 }
 0x1a5   :  { %s491_s18 = smov [#allocation6]  }
 0x1a6   :  { %400 = vpow2.f32 %v220_v63  ;;  %s255_s19 = sshll.u32 %s491_s18, 4  ;;  %s256_s19 = int_to_ptr.vmem [resolvable:$true] %s255_s19 }
 0x1a7   :  { %s450_s20 = scalar_lea.vmem %s256_s19, 128  ;;  %p455_p3 = scmp.lt.s32.totalorder %s256_s19, %s256_s19 }
 0x1a8   :  { %p451_p2 = scmp.ne.s32.totalorder %s256_s19, %s450_s20  ;;  %p456_p4 = scmp.lt.s32.totalorder %s450_s20, %s450_s20 }
 0x1aa   :  { %p457_p5 = por %p456_p4, %p455_p3 }
 0x1ac   :  { %p458_p6 = pnand %p457_p5, %p451_p2 }
 0x1ae   :  { %v399_v0 = vpop.eup %398 }
 0x1af   :  { %v225_v2 = vadd.f32 1.0, %v399_v0 }
 0x1b0   :  { %v401_v1 = vpop.eup %400 }
 0x1b1   :  { %v224_v3 = vadd.f32 1.0, %v401_v1  ;;  %402 = vrcp.f32 %v225_v2 }
 0x1b3   :  { %404 = vrcp.f32 %v224_v3 }
 0x1bb   :  { %v403_v4 = vpop.eup %402 }
 0x1bd   :  { %v405_v5 = vpop.eup %404 }
 0x1be   :  { %v281_v6 = vpack.c.bf16 %v403_v4, %v405_v5 }
 0x1c0   :  { %282 = vst [vmem:[#allocation6] sm:$0xff] %v281_v6  }
 0x1c1   :  { %461 = shalt.err (!%p458_p6)
}
 0x1c2   :  { %s462_s22 = scalar_lea.hbm %s584_s4, 128 }
 0x1c3   :  { %p463_p7 = scmp.ne.s32.totalorder %s584_s4, %s462_s22  ;;  %p466_p8 = scmp.lt.u32.totalorder %s462_s22, %s584_s4 }
 0x1c5   :  { %p468_p9 = pnand %p466_p8, %p463_p7 }
 0x1c7   :  { %471 = shalt.err (!%p468_p9)
}
 0x1c8   :  { %s492_s27 = smov 64   ;;  %s493_s28 = smov 4  }
 0x1c9   :  { %261 = dma.vmem_to_hbm [thread:$0]  %s256_s19, 128, %s584_s4, [#allocation7], %s492_s27, %s492_s27, %s493_s28  }
 0x1ca   :  { %474 = dma.done.wait [#allocation4], 256  }
 0x1cb   :  { %475 = vsyncadd [#allocation4], 4294967040 }
 0x1cc   :  { %476 = dma.done.wait [#allocation7], 128  }
 0x1cd   :  { %477 = vsyncadd [#allocation7], 4294967168 }
 0x1ce   :  { %268 = vsyncpa [#allocation3], 1 }
 0x1cf   :  { %269 = vsyncpa [#allocation4], 1 }
 0x1d0   :  { %270 = vsyncpa [#allocation7], 1 }

</bundles_post_ra>
